<compile_context>
chip_gen: v7x
topology: tpu7x:2x2x1
jax: 0.10.0
libtpu: 0.0.40
codegen_flags: <defaults>
</compile_context>

<pallas_src>
import jax
import jax.numpy as jnp
from jax.experimental import pallas as pl
from jax.experimental.pallas import tpu as pltpu

SUB, LANE = 8, 128  # f32 vreg tile


def linear_add_relu_kernel(x_ref, params_ref, other_ref, o_ref):
    # x_ref:      (Cin,)                 SMEM (scalars)
    # params_ref: (Cin*rows + rows, 128) VMEM: packed weight^T rows, then bias
    # other_ref:  (rows, 128)            VMEM (runtime `other`, sublane-packed)
    # o_ref:      (rows, 128)            VMEM
    cin = x_ref.shape[0]
    rows = o_ref.shape[0]
    # bias + other  (static slice of params_ref = zero-cost view)
    acc = params_ref[cin * rows:(cin + 1) * rows, :] + other_ref[...]
    for k in range(cin):  # static unroll, Cin = 3: scalar * vreg FMAs on VPU
        acc = acc + x_ref[k] * params_ref[k * rows:(k + 1) * rows, :]
    o_ref[...] = jnp.maximum(acc, 0.0)


def prepare_params(weight, bias):
    """One-time parameter prep (hoisted off the per-call path).

    weight: (Cout, Cin) torch convention; bias: (Cout,).
    Returns a single packed f32 parameter array of shape
    (Cin*rows + rows, 128) where rows = Cout_padded // 128.
    """
    cout, cin = weight.shape
    tile = SUB * LANE
    cout_pad = ((cout + tile - 1) // tile) * tile
    rows = cout_pad // LANE

    wt = jnp.zeros((cin, cout_pad), jnp.float32)
    wt = wt.at[:, :cout].set(weight.T.astype(jnp.float32))
    wt = wt.reshape(cin * rows, LANE)                       # packed weight^T

    b = jnp.zeros((cout_pad,), jnp.float32)
    b = b.at[:cout].set(bias.astype(jnp.float32))
    b = b.reshape(rows, LANE)                               # packed bias

    params = jnp.concatenate([wt, b], axis=0)               # one VMEM input
    return params, cout, cout_pad


def make_forward(cin, cout, cout_pad):
    rows = cout_pad // LANE

    def forward(x1, other, params):
        assert x1.shape == (1, cin), "kernel specialized for batch=1 input"
        x_flat = x1.reshape(cin).astype(jnp.float32)
        # Pad/pack the runtime `other` here so it fuses under jit and never
        # goes stale between calls.
        other_pad = (
            jnp.zeros((cout_pad,), jnp.float32)
            .at[:cout].set(other.reshape(-1).astype(jnp.float32))
            .reshape(rows, LANE)
        )
        out_packed = pl.pallas_call(
            linear_add_relu_kernel,
            out_shape=jax.ShapeDtypeStruct((rows, LANE), jnp.float32),
            in_specs=[
                pl.BlockSpec(memory_space=pltpu.MemorySpace.SMEM),  # x1 scalars
                pl.BlockSpec(memory_space=pltpu.MemorySpace.VMEM),  # weight^T|bias
                pl.BlockSpec(memory_space=pltpu.MemorySpace.VMEM),  # other
            ],
            out_specs=pl.BlockSpec(memory_space=pltpu.MemorySpace.VMEM),
        )(x_flat, params, other_pad)
        # Unpack (rows,128) -> (1, Cout); fuses with the custom call under jit.
        return out_packed.reshape(cout_pad)[:cout].reshape(1, cout)

    return jax.jit(forward)


if __name__ == "__main__":
    key = jax.random.PRNGKey(0)
    k_x, k_w, k_b, k_o = jax.random.split(key, 4)

    in_features, out_features = 3, 1000
    # Deterministic parameter init (mimics torch.nn.Linear uniform init range).
    bound = 1.0 / (in_features ** 0.5)
    weight = jax.random.uniform(
        k_w, (out_features, in_features), jnp.float32, -bound, bound)
    bias = jax.random.uniform(
        k_b, (out_features,), jnp.float32, -bound, bound)

    x1 = jax.random.normal(k_x, (1, in_features), jnp.float32)
    other = jax.random.normal(k_o, (out_features,), jnp.float32)

    # One-time parameter preparation (transpose + pad + sublane pack + concat).
    params, cout, cout_pad = prepare_params(weight, bias)
    forward = make_forward(in_features, cout, cout_pad)

    out = forward(x1, other, params)
    jax.block_until_ready(out)

    # Reference check in plain JAX.
    ref = jnp.maximum(x1 @ weight.T + bias + other, 0.0)
    assert out.shape == (1, out_features)
    assert jnp.allclose(out, ref, atol=1e-5, rtol=1e-5)

    print("KERNEL_OK")
</pallas_src>

<mosaic_0001>
module attributes {stable_mosaic.version = 11 : i64} {
  func.func @linear_add_relu_kernel(%arg0: memref<3xf32, #tpu.memory_space<smem>>, %arg1: memref<32x128xf32, #tpu.memory_space<vmem>>, %arg2: memref<8x128xf32, #tpu.memory_space<vmem>>, %arg3: memref<8x128xf32, #tpu.memory_space<vmem>>) attributes {dimension_semantics = [], scalar_prefetch = 0 : i64, scratch_operands = 0 : i64, tpu.core_type = #tpu.core_type<tc>} {
    %c24 = arith.constant 24 : index
    %c0 = arith.constant 0 : index
    %0 = vector.load %arg1[%c24, %c0] : memref<32x128xf32, #tpu.memory_space<vmem>>, vector<8x128xf32>
    %c0_0 = arith.constant 0 : index
    %c0_1 = arith.constant 0 : index
    %1 = vector.load %arg2[%c0_0, %c0_1] : memref<8x128xf32, #tpu.memory_space<vmem>>, vector<8x128xf32>
    %2 = arith.addf %0, %1 : vector<8x128xf32>
    %c0_2 = arith.constant 0 : index
    %3 = memref.load %arg0[%c0_2] : memref<3xf32, #tpu.memory_space<smem>>
    %c0_3 = arith.constant 0 : index
    %c0_4 = arith.constant 0 : index
    %4 = vector.load %arg1[%c0_3, %c0_4] : memref<32x128xf32, #tpu.memory_space<vmem>>, vector<8x128xf32>
    %5 = vector.broadcast %3 : f32 to vector<8x128xf32>
    %6 = arith.mulf %5, %4 : vector<8x128xf32>
    %7 = arith.addf %2, %6 : vector<8x128xf32>
    %c1 = arith.constant 1 : index
    %8 = memref.load %arg0[%c1] : memref<3xf32, #tpu.memory_space<smem>>
    %c8 = arith.constant 8 : index
    %c0_5 = arith.constant 0 : index
    %9 = vector.load %arg1[%c8, %c0_5] : memref<32x128xf32, #tpu.memory_space<vmem>>, vector<8x128xf32>
    %10 = vector.broadcast %8 : f32 to vector<8x128xf32>
    %11 = arith.mulf %10, %9 : vector<8x128xf32>
    %12 = arith.addf %7, %11 : vector<8x128xf32>
    %c2 = arith.constant 2 : index
    %13 = memref.load %arg0[%c2] : memref<3xf32, #tpu.memory_space<smem>>
    %c16 = arith.constant 16 : index
    %c0_6 = arith.constant 0 : index
    %14 = vector.load %arg1[%c16, %c0_6] : memref<32x128xf32, #tpu.memory_space<vmem>>, vector<8x128xf32>
    %15 = vector.broadcast %13 : f32 to vector<8x128xf32>
    %16 = arith.mulf %15, %14 : vector<8x128xf32>
    %17 = arith.addf %12, %16 : vector<8x128xf32>
    %cst = arith.constant 0.000000e+00 : f32
    %18 = vector.broadcast %cst : f32 to vector<8x128xf32>
    %19 = arith.maximumf %17, %18 : vector<8x128xf32>
    %c0_7 = arith.constant 0 : index
    %c0_8 = arith.constant 0 : index
    %20 = vector.load %arg3[%c0_7, %c0_8] : memref<8x128xf32, #tpu.memory_space<vmem>>, vector<8x128xf32>
    tpu.vector_store %arg3[%c0_7, %c0_8], %19 {strides = array<i32>} : memref<8x128xf32, #tpu.memory_space<vmem>>, vector<8x128xf32>,
    return
  }
}

</mosaic_0001>

<bundles_post_ra>
// kernel: forward.1
= control target key start
LH: loop header
LB: loop body
LE: loop exit
PB: predicated region body
PF: predicated region fallthrough
CT: control target
= control target key end

     0   :  { %8 = vsyncpa [#allocation5], 0  ;;  %s202_s0 = inlined_call_operand.vmem [shape: f32[3], index: 0, kind: input, shape index: {}]   ;;  %s203_s1 = inlined_call_operand.hbm [shape: f32[32,128], index: 1, kind: input, shape index: {}]   ;;  %s204_s2 = inlined_call_operand.vmem [shape: f32[8,128], index: 2, kind: input, shape index: {}]   ;;  %s205_s3 = inlined_call_operand.hbm [shape: f32[8,128], index: 3, kind: output, shape index: {}]  }
   0x1   :  { %9 = vsyncpa [#allocation3], 0 }
   0x2   :  { %10 = vsyncpa [#allocation4], 0  ;;  %s17_s14 = sshll.u32 %s202_s0, 4  ;;  %s18_s14 = int_to_ptr.vmem [resolvable:$true] %s17_s14 }
   0x3   :  { %s85_s15 = scalar_lea.vmem %s18_s14, 16  ;;  %p90_p1 = scmp.lt.s32.totalorder %s18_s14, %s18_s14 }
   0x4   :  { %p86_p0 = scmp.ne.s32.totalorder %s18_s14, %s85_s15  ;;  %p91_p2 = scmp.lt.s32.totalorder %s85_s15, %s85_s15 }
   0x6   :  { %p92_p3 = por %p91_p2, %p90_p1 }
   0x8   :  { %p93_p4 = pnand %p92_p3, %p86_p0 }
   0xa   :  { %96 = shalt.err (!%p93_p4)
}
   0xb   :  { %s147_s16 = smov [#allocation2]   ;;  %s148_s17 = smov [#allocation6]  }
   0xc   :  { %20 = dma.vmem_to_smem %s18_s14, 16, %s147_s16, [#allocation5]  }
   0xd   :  { %s26_s18 = sshll.u32 %s148_s17, 4  ;;  %s97_s21 = scalar_lea.hbm %s203_s1, 512  ;;  %s27_s18 = int_to_ptr.vmem [resolvable:$true] %s26_s18 }
   0xe   :  { %p98_p5 = scmp.ne.s32.totalorder %s203_s1, %s97_s21  ;;  %p101_p6 = scmp.lt.u32.totalorder %s97_s21, %s203_s1 }
  0x10   :  { %p103_p7 = pnand %p101_p6, %p98_p5 }
  0x12   :  { %106 = shalt.err (!%p103_p7)
}
  0x13   :  { %s107_s25 = scalar_lea.vmem %s27_s18, 512  ;;  %p112_p9 = scmp.lt.s32.totalorder %s27_s18, %s27_s18 }
  0x14   :  { %p108_p8 = scmp.ne.s32.totalorder %s27_s18, %s107_s25  ;;  %p113_p10 = scmp.lt.s32.totalorder %s107_s25, %s107_s25 }
  0x16   :  { %p114_p11 = por %p113_p10, %p112_p9 }
  0x18   :  { %p115_p12 = pnand %p114_p11, %p108_p8 }
  0x1a   :  { %118 = shalt.err (!%p115_p12)
}
  0x1b   :  { %s149_s26 = smov 128   ;;  %s150_s27 = smov 8  }
  0x1c   :  { %32 = dma.hbm_to_vmem [thread:$0]  %s203_s1, 512, %s27_s18, [#allocation3], %s149_s26, %s149_s26, %s150_s27  }
  0x1d   :  { %141 = dma.done.wait [#allocation5], 16  }
  0x1e   :  { %142 = vsyncadd [#allocation5], 4294967280 }
  0x1f   :  { %143 = dma.done.wait [#allocation3], 512  }
  0x20   :  { %144 = vsyncadd [#allocation3], 4294966784 }
  0x21   :  { %41 = sfence }
  0x22   :  { %s45_s30 = sld [smem:[#allocation2]]  ;;  %s78_s4 = sld [smem:[#allocation2 + $0x1]]  ;;  %v42_v0 = vld [vmem:[#allocation6 + $0x18] sm:$0xff]  ;;  %v43_v1 = vld [vmem:[%s204_s2] sm:$0xff]  ;;  %v51_v4 = vld [vmem:[#allocation6 + $0x8] sm:$0xff] }
  0x23   :  { %s79_s5 = sld [smem:[#allocation2 + $0x2]]  ;;  %v46_v2 = vld [vmem:[#allocation6] sm:$0xff]  ;;  %v44_v3 = vadd.f32 %v43_v1, %v42_v0  ;;  %v56_v6 = vld [vmem:[#allocation6 + $0x10] sm:$0xff]  ;;  %s151_s1 = smov [#allocation7]  }
  0x24   :  { %s68_s8 = sshll.u32 %s151_s1, 4  ;;  %s69_s8 = int_to_ptr.vmem [resolvable:$true] %s68_s8 }
  0x25   :  { %s119_s9 = scalar_lea.vmem %s69_s8, 128  ;;  %p124_p0 = scmp.lt.s32.totalorder %s69_s8, %s69_s8 }
  0x26   :  { %p120_p13 = scmp.ne.s32.totalorder %s69_s8, %s119_s9  ;;  %p125_p1 = scmp.lt.s32.totalorder %s119_s9, %s119_s9 }
  0x28   :  { %v47_v5 = vstv %s45_s30  ;;  %v52_v8 = vstv %s78_s4  ;;  %p126_p2 = por %p125_p1, %p124_p0 }
  0x29   :  { %v48_v7 = vmul.f32 %v47_v5, %v46_v2  ;;  %v57_v9 = vstv %s79_s5  ;;  %v53_v10 = vmul.f32 %v52_v8, %v51_v4 }
  0x2a   :  { %v58_v12 = vmul.f32 %v57_v9, %v56_v6  ;;  %p127_p3 = pnand %p126_p2, %p120_p13 }
  0x2b   :  { %v49_v11 = vadd.f32 %v48_v7, %v44_v3 }
  0x2d   :  { %v54_v13 = vadd.f32 %v53_v10, %v49_v11 }
  0x2f   :  { %v59_v14 = vadd.f32 %v58_v12, %v54_v13 }
  0x31   :  { %v60_v15 = vmax.f32 %v59_v14, 0.0 }
  0x33   :  { %61 = vst [vmem:[#allocation7] sm:$0xff] %v60_v15 }
  0x34   :  { %130 = shalt.err (!%p127_p3)
}
  0x35   :  { %s131_s11 = scalar_lea.hbm %s205_s3, 128 }
  0x36   :  { %p132_p4 = scmp.ne.s32.totalorder %s205_s3, %s131_s11  ;;  %p135_p5 = scmp.lt.u32.totalorder %s131_s11, %s205_s3 }
  0x38   :  { %p137_p6 = pnand %p135_p5, %p132_p4 }
  0x3a   :  { %140 = shalt.err (!%p137_p6)
}
  0x3b   :  { %71 = dma.vmem_to_hbm [thread:$0]  %s69_s8, 128, %s205_s3, [#allocation4]  }
  0x3c   :  { %145 = dma.done.wait [#allocation4], 128  }
  0x3d   :  { %146 = vsyncadd [#allocation4], 4294967168 }
  0x3e   :  { %75 = vsyncpa [#allocation3], 1 }
  0x3f   :  { %76 = vsyncpa [#allocation4], 1 }
  0x40   :  { %77 = vsyncpa [#allocation5], 1 }

</bundles_post_ra>
